<compile_context>
chip_gen: v7x
topology: tpu7x:2x2x1
jax: 0.10.0
libtpu: 0.0.40
codegen_flags: <defaults>
</compile_context>

<pallas_src>
import functools

import jax
import jax.numpy as jnp
from jax.experimental import pallas as pl
from jax.experimental.pallas import tpu as pltpu

BN_EPS = 1e-5


# --------------------------------------------------------------------------
# pltpu.roll sign-convention probe (numpy convention -> +1).  Cached per
# backend so an interpret/CPU probe cannot poison the hardware path.
@functools.lru_cache(maxsize=None)
def _roll_forward_sign(backend):
    del backend  # cache key only

    def probe_kernel(x_ref, o_ref):
        o_ref[...] = pltpu.roll(x_ref[...], 1, axis=1)

    x = jnp.broadcast_to(jnp.arange(128, dtype=jnp.float32), (8, 128))
    y = pl.pallas_call(
        probe_kernel,
        out_shape=jax.ShapeDtypeStruct((8, 128), jnp.float32))(x)
    # numpy convention: y[0, 0] == x[0, -1] == 127 ; flipped: y[0, 0] == 1.
    return 1 if float(y[0, 0]) > 64.0 else -1


# ------------------------------ Pallas kernel ------------------------------
def make_cspnet_kernel(registry, slab_order, nb, kernel_size, roll_sign, mxu_dtype):
    K3 = kernel_size

    def kernel(x_ref, *refs):
        o_ref = refs[-1]
        slab_refs = dict(zip(slab_order, refs[:-1]))

        def get(name):
            sname, off, rows = registry[name]
            return slab_refs[sname][off:off + rows, :]

        # Slice every operand out of its slab once per grid step; cast the MXU
        # operands (weights) once here instead of per-dot / per-sample.
        W = {n: get(n).astype(mxu_dtype) for n in registry if not n.startswith("b:")}
        B = {n[2:]: get(n) for n in registry if n.startswith("b:")}   # f32 biases

        L = x_ref.shape[-1]
        lane = jax.lax.broadcasted_iota(jnp.int32, (1, L), 1)
        # Hoisted edge masks for all tap shifts used below (shared by samples).
        half = max(1, K3 // 2)
        masks = {d: (lane < L - d) if d > 0 else (lane >= -d)
                 for d in range(-half, half + 1) if d != 0}

        def shift(a, d):
            """y[:, l] = a[:, l + d]; zero where l + d falls outside [0, L)."""
            if d == 0:
                return a
            amt = (roll_sign * (-d)) % L                       # static python int
            return jnp.where(masks[d], pltpu.roll(a, amt, axis=1), 0.0)

        def conv_post(y, b, k):
            # y: tap-stacked MXU output (k*Co, L); taps become lane shifts.
            co = y.shape[0] // k
            acc = shift(y[0:co], -(k // 2))
            for t in range(1, k):
                acc = acc + shift(y[t * co:(t + 1) * co], t - k // 2)
            return jnp.maximum(acc + b, 0.0)

        def conv_bn_relu(inp, wname, bname, k):
            w = W[wname]
            y = jnp.dot(w, inp.astype(w.dtype), preferred_element_type=jnp.float32)
            return conv_post(y, B[bname], k)

        def se_gate(h, pfx):
            # FC1 lane-dense (pool commutes with the linear FC1); FC2 + sigmoid
            # run on the pooled (8,1) column -> 8 EUP sigmoids, not 8*L.
            w1 = W[pfx + "_sw1"]
            t1 = jnp.dot(w1, h.astype(w1.dtype), preferred_element_type=jnp.float32)
            s1 = jnp.maximum(jnp.mean(t1, axis=1, keepdims=True) + B[pfx + "_sb1"], 0.0)
            w2 = W[pfx + "_sw2"]
            t2 = jnp.dot(w2, s1.astype(w2.dtype), preferred_element_type=jnp.float32)
            return jax.nn.sigmoid(t2 + B[pfx + "_sb2"])        # (Cn, 1)

        def se_res_block(inp, pfx):
            h = conv_bn_relu(inp, pfx + "_w1", pfx + "_b1", 3)
            h = conv_bn_relu(h, pfx + "_w2", pfx + "_b2", 3)
            h = conv_bn_relu(h, pfx + "_w3", pfx + "_b3", 1)
            return inp + h * se_gate(h, pfx)                   # gate broadcasts over L

        cn = registry["l12"][2] // 2
        # nb independent per-sample chains per step: static unroll lets the LLO
        # scheduler interleave MXU/VPU/XLU/EUP slots across samples.
        for s in range(nb):
            xs = x_ref[s].astype(mxu_dtype)                    # (Ci, L)
            yz = jnp.dot(W["l12"], xs, preferred_element_type=jnp.float32)
            yz = jnp.maximum(yz + B["l12"], 0.0)               # fused layers1+layers2[0]
            y1, z = yz[:cn], yz[cn:]
            z = se_res_block(z, "rb1")                         # layers2[1]
            z = se_res_block(z, "rb2")                         # layers2[2]
            y2 = conv_bn_relu(z, "l2b", "l2b", 1)              # layers2[3]
            # layers3 without materializing the channel concat: split weights.
            ypre = (jnp.dot(W["l3a"], y1.astype(mxu_dtype),
                            preferred_element_type=jnp.float32)
                    + jnp.dot(W["l3b"], y2.astype(mxu_dtype),
                              preferred_element_type=jnp.float32))
            o_ref[s] = conv_post(ypre, B["l3"], K3).astype(o_ref.dtype)

    return kernel


# --------------------------------- wrapper ----------------------------------
def cspnet_block(x_ncl, slabs, registry, *, kernel_size, stride=1,
                 mxu_dtype=jnp.bfloat16, samples_per_step=None):
    """CSPNetBlock forward; x_ncl: (N, Ci, L); slabs/registry from fold_params."""
    N, Ci, L = x_ncl.shape
    Co = registry["b:l3"][2]
    assert kernel_size % 2 == 1
    # TODO(synk): even kernel_size (PyTorch pads k//2 both sides -> longer output).

    # Samples per grid step: amortize per-step overhead, but keep >=2 grid steps
    # so dimension_semantics=("parallel",) can shard across v7x's two TCs.
    if samples_per_step is None:
        nb = 1
        for cand in range(min(8, N), 0, -1):
            if N % cand == 0 and (N // cand >= 2 or N < 2):
                nb = cand
                break
    else:
        nb = samples_per_step
    assert N % nb == 0, (N, nb)

    slab_order = tuple(slabs.keys())
    kernel = make_cspnet_kernel(registry, slab_order, nb, kernel_size,
                                _roll_forward_sign(jax.default_backend()), mxu_dtype)

    def const_spec(a):
        z = (0,) * a.ndim
        return pl.BlockSpec(a.shape, lambda n, _z=z: _z)

    # VMEM budget: double-buffered x/out blocks + resident weight slabs + live
    # f32 intermediates + headroom.  v7x total VMEM is 64 MiB (default scoped
    # limit 32 MiB); v5e's default scoped limit is only 16 MiB, so be explicit.
    in_bytes = nb * Ci * L * x_ncl.dtype.itemsize
    out_bytes = nb * Co * L * x_ncl.dtype.itemsize
    slab_bytes = sum(int(a.size) * a.dtype.itemsize for a in slabs.values())
    live_bytes = nb * 24 * Ci * L * 4                    # rough live-intermediate bound
    vmem_limit = 2 * (in_bytes + out_bytes + slab_bytes) + live_bytes + (4 << 20)
    vmem_limit = int(min(max(vmem_limit, 32 << 20), 48 << 20))

    out = pl.pallas_call(
        kernel,
        out_shape=jax.ShapeDtypeStruct((N, Co, L), x_ncl.dtype),
        grid_spec=pltpu.PrefetchScalarGridSpec(
            num_scalar_prefetch=0,
            grid=(N // nb,),
            in_specs=[pl.BlockSpec((nb, Ci, L), lambda n: (n, 0, 0))]
                     + [const_spec(slabs[k]) for k in slab_order],
            out_specs=pl.BlockSpec((nb, Co, L), lambda n: (n, 0, 0)),
        ),
        compiler_params=pltpu.CompilerParams(
            dimension_semantics=("parallel",),
            vmem_limit_bytes=vmem_limit),
    )(x_ncl, *[slabs[k] for k in slab_order])

    if stride > 1:
        # 'same'-padded strided conv == stride-1 'same' conv sampled at l*stride.
        # TODO(synk): subsample inside the kernel (strided lane store) to avoid
        # this extra HBM pass and the unused final-conv lanes.
        out = out[:, :, ::stride]
    return out


# ---------------------- deterministic parameter init ------------------------
def make_raw_params(key, Ci, Co, kernel_size):
    """PyTorch-style parameters: conv weights (O, I, K), BN stats, SE linears."""
    assert Ci % 2 == 0 and (Ci // 2) % 4 == 0
    Cn = Ci // 2
    ks = iter(jax.random.split(key, 64))

    def nrm(shape, scale=0.1):
        return scale * jax.random.normal(next(ks), shape, dtype=jnp.float32)

    def bn(C):
        return dict(gamma=1.0 + nrm((C,)), beta=nrm((C,)),
                    mean=nrm((C,)), var=1.0 + jnp.abs(nrm((C,))))

    def res_params(C):  # SENet residual block on C channels
        return dict(conv1_w=nrm((2 * C, C, 3)), bn1=bn(2 * C),
                    conv2_w=nrm((2 * C, 2 * C, 3)), bn2=bn(2 * C),
                    conv3_w=nrm((C, 2 * C, 1)), bn3=bn(C),
                    se_w1=nrm((C // 4, C)), se_b1=nrm((C // 4,)),
                    se_w2=nrm((C, C // 4)), se_b2=nrm((C,)))

    return dict(
        l1_w=nrm((Cn, Ci, 1)), l1_bn=bn(Cn),
        l2a_w=nrm((Cn, Ci, 1)), l2a_bn=bn(Cn),
        rb1=res_params(Cn), rb2=res_params(Cn),
        l2b_w=nrm((Cn, Cn, 1)), l2b_bn=bn(Cn),
        l3_w=nrm((Co, Ci, kernel_size)), l3_bn=bn(Co),
    )


def fold_params(raw):
    """Fold inference BN into conv weights, tap-stack them, fuse layers1+layers2[0],
    split layers3 across the concat halves, zero-pad the tiny SE matrices to
    8-row/8-col blocks, and pack everything into a few operand slabs (one per
    contraction width + one bias slab).  Returns (slabs, registry)."""
    Cn, Ci = raw["l1_w"].shape[0], raw["l1_w"].shape[1]
    assert Cn % 8 == 0, "Cn must be a multiple of 8 for sublane-aligned slab slices"

    def fold_conv(w, bn):
        scale = bn["gamma"] / jnp.sqrt(bn["var"] + BN_EPS)              # (Co,)
        wf = w * scale[:, None, None]                                   # (Co, Cin, K)
        b = (bn["beta"] - bn["mean"] * scale)[:, None]                  # (Co, 1)
        K = w.shape[2]
        w_stack = jnp.concatenate([wf[:, :, t] for t in range(K)], axis=0)
        return w_stack, b                                               # (K*Co, Cin)

    def pad_rows(a, rows):
        return jnp.pad(a, ((0, rows - a.shape[0]), (0, 0)))

    weights, biases = {}, {}

    w_l1, b_l1 = fold_conv(raw["l1_w"], raw["l1_bn"])
    w_l2a, b_l2a = fold_conv(raw["l2a_w"], raw["l2a_bn"])
    weights["l12"] = jnp.concatenate([w_l1, w_l2a], axis=0)     # fused 1x1 convs
    biases["l12"] = jnp.concatenate([b_l1, b_l2a], axis=0)

    def fold_res(pfx, p):
        for i in (1, 2, 3):
            w, b = fold_conv(p[f"conv{i}_w"], p[f"bn{i}"])
            weights[f"{pfx}_w{i}"], biases[f"{pfx}_b{i}"] = w, b
        Cm = p["se_w1"].shape[0]
        pad = max(8, -(-Cm // 8) * 8)
        weights[f"{pfx}_sw1"] = pad_rows(p["se_w1"], pad)                       # (8, Cn)
        biases[f"{pfx}_sb1"] = pad_rows(p["se_b1"][:, None], pad)               # (8, 1)
        weights[f"{pfx}_sw2"] = jnp.pad(p["se_w2"], ((0, 0), (0, pad - Cm)))    # (Cn, 8)
        biases[f"{pfx}_sb2"] = p["se_b2"][:, None]

    fold_res("rb1", raw["rb1"])
    fold_res("rb2", raw["rb2"])

    weights["l2b"], biases["l2b"] = fold_conv(raw["l2b_w"], raw["l2b_bn"])
    w_l3, biases["l3"] = fold_conv(raw["l3_w"], raw["l3_bn"])            # (K*Co, Ci)
    weights["l3a"], weights["l3b"] = w_l3[:, :Cn], w_l3[:, Cn:]          # concat-free l3

    # ---- pack into slabs: one per weight column-width, plus one bias slab ----
    # Slabs stay f32 (tiny, ~15 KiB total) so all row slices are 8-aligned f32
    # tiles; the MXU-dtype cast happens once per grid step inside the kernel.
    slabs, registry = {}, {}
    by_cols = {}
    for name, w in weights.items():
        by_cols.setdefault(int(w.shape[1]), []).append(name)
    for cols in sorted(by_cols, reverse=True):
        sname, off, parts = f"w{cols}", 0, []
        for name in by_cols[cols]:
            rows = int(weights[name].shape[0])
            registry[name] = (sname, off, rows)
            parts.append(weights[name])
            off += rows
        slabs[sname] = jnp.concatenate(parts, axis=0).astype(jnp.float32)
    off, parts = 0, []
    for name, b in biases.items():
        rows = int(b.shape[0])
        registry["b:" + name] = ("bias", off, rows)
        parts.append(b)
        off += rows
    slabs["bias"] = jnp.concatenate(parts, axis=0).astype(jnp.float32)
    return slabs, registry


# --------------------------- pure-JAX reference ------------------------------
def _conv_bn_relu_ref(x, w, bn, pad, stride=1):
    y = jax.lax.conv_general_dilated(
        x, w, window_strides=(stride,), padding=[(pad, pad)],
        dimension_numbers=("NCH", "OIH", "NCH"))
    scale = bn["gamma"] / jnp.sqrt(bn["var"] + BN_EPS)
    y = y * scale[None, :, None] + (bn["beta"] - bn["mean"] * scale)[None, :, None]
    return jnp.maximum(y, 0.0)


def _se_res_block_ref(x, p):
    h = _conv_bn_relu_ref(x, p["conv1_w"], p["bn1"], 1)
    h = _conv_bn_relu_ref(h, p["conv2_w"], p["bn2"], 1)
    h = _conv_bn_relu_ref(h, p["conv3_w"], p["bn3"], 0)
    pooled = jnp.mean(h, axis=-1)                                   # (N, Cn)
    s = jnp.maximum(pooled @ p["se_w1"].T + p["se_b1"], 0.0)
    s = jax.nn.sigmoid(s @ p["se_w2"].T + p["se_b2"])
    return x + h * s[:, :, None]


def reference(x, raw, kernel_size, stride):
    y1 = _conv_bn_relu_ref(x, raw["l1_w"], raw["l1_bn"], 0)
    z = _conv_bn_relu_ref(x, raw["l2a_w"], raw["l2a_bn"], 0)
    z = _se_res_block_ref(z, raw["rb1"])
    z = _se_res_block_ref(z, raw["rb2"])
    y2 = _conv_bn_relu_ref(z, raw["l2b_w"], raw["l2b_bn"], 0)
    y = jnp.concatenate([y1, y2], axis=1)
    return _conv_bn_relu_ref(y, raw["l3_w"], raw["l3_bn"], kernel_size // 2, stride)


# ------------------------------------ main -----------------------------------
if __name__ == "__main__":
    N, Ci, Co, L = 8, 16, 16, 128        # L multiple of 128 -> lane-dense tiles
    kernel_size, stride = 3, 1

    key = jax.random.PRNGKey(0)
    kx, kp = jax.random.split(key)
    x = jax.random.normal(kx, (N, Ci, L), dtype=jnp.float32)

    raw = make_raw_params(kp, Ci, Co, kernel_size)
    slabs, registry = fold_params(raw)
    ref = reference(x, raw, kernel_size, stride)

    # Tight numerical check with f32 MXU operands.
    out32 = cspnet_block(x, slabs, registry, kernel_size=kernel_size,
                         stride=stride, mxu_dtype=jnp.float32)
    out32 = jax.block_until_ready(out32)
    assert out32.shape == ref.shape, (out32.shape, ref.shape)
    err32 = float(jnp.max(jnp.abs(out32 - ref)))
    assert err32 < 5e-3, f"f32 max abs err {err32}"

    # Default (production) path: bf16 MXU operands, f32 accumulation.
    out16 = cspnet_block(x, slabs, registry, kernel_size=kernel_size, stride=stride)
    out16 = jax.block_until_ready(out16)
    assert out16.shape == ref.shape, (out16.shape, ref.shape)
    err16 = float(jnp.max(jnp.abs(out16 - ref)))
    assert err16 < 1e-1, f"bf16 max abs err {err16}"

    print("KERNEL_OK")
</pallas_src>

<mosaic_0001>
module attributes {stable_mosaic.version = 11 : i64} {
  func.func @probe_kernel(%arg0: memref<8x128xf32, #tpu.memory_space<vmem>>, %arg1: memref<8x128xf32, #tpu.memory_space<vmem>>) attributes {dimension_semantics = [], scalar_prefetch = 0 : i64, scratch_operands = 0 : i64, tpu.core_type = #tpu.core_type<tc>} {
    %c0 = arith.constant 0 : index
    %c0_0 = arith.constant 0 : index
    %0 = vector.load %arg0[%c0, %c0_0] : memref<8x128xf32, #tpu.memory_space<vmem>>, vector<8x128xf32>
    %c1_i32 = arith.constant 1 : i32
    %1 = tpu.dynamic_rotate %0 by %c1_i32 dim 1 : vector<8x128xf32>, i32 -> vector<8x128xf32>
    %c0_1 = arith.constant 0 : index
    %c0_2 = arith.constant 0 : index
    %2 = vector.load %arg1[%c0_1, %c0_2] : memref<8x128xf32, #tpu.memory_space<vmem>>, vector<8x128xf32>
    tpu.vector_store %arg1[%c0_1, %c0_2], %1 {strides = array<i32>} : memref<8x128xf32, #tpu.memory_space<vmem>>, vector<8x128xf32>,
    return
  }
}

</mosaic_0001>

<bundles_post_ra>
// kernel: tpu_custom_call.1
= control target key start
LH: loop header
LB: loop body
LE: loop exit
PB: predicated region body
PF: predicated region fallthrough
CT: control target
= control target key end

     0   :  { %6 = vsyncpa [#allocation3], 0  ;;  %s128_s0 = inlined_call_operand.hbm [shape: f32[8,128], index: 0, kind: input, shape index: {}]   ;;  %s129_s1 = inlined_call_operand.hbm [shape: f32[8,128], index: 1, kind: output, shape index: {}]  }
   0x1   :  { %7 = vsyncpa [#allocation4], 0  ;;  %s91_s6 = smov [#allocation2]   ;;  %s43_s10 = scalar_lea.hbm %s128_s0, 128 }
   0x2   :  { %s14_s7 = sshll.u32 %s91_s6, 4  ;;  %p44_p0 = scmp.ne.s32.totalorder %s128_s0, %s43_s10  ;;  %s15_s7 = int_to_ptr.vmem [resolvable:$true] %s14_s7 }
   0x3   :  { %p47_p1 = scmp.lt.u32.totalorder %s43_s10, %s128_s0 }
   0x5   :  { %p49_p2 = pnand %p47_p1, %p44_p0 }
   0x7   :  { %52 = shalt.err (!%p49_p2)
}
   0x8   :  { %s53_s15 = scalar_lea.vmem %s15_s7, 128  ;;  %p58_p4 = scmp.lt.s32.totalorder %s15_s7, %s15_s7 }
   0x9   :  { %p54_p3 = scmp.ne.s32.totalorder %s15_s7, %s53_s15  ;;  %p59_p5 = scmp.lt.s32.totalorder %s53_s15, %s53_s15 }
   0xb   :  { %p60_p6 = por %p59_p5, %p58_p4 }
   0xd   :  { %p61_p7 = pnand %p60_p6, %p54_p3 }
   0xf   :  { %64 = shalt.err (!%p61_p7)
}
  0x10   :  { %17 = dma.hbm_to_vmem [thread:$0]  %s128_s0, 128, %s15_s7, [#allocation3]  }
  0x11   :  { %87 = dma.done.wait [#allocation3], 128  }
  0x12   :  { %88 = vsyncadd [#allocation3], 4294967168  ;;  %v21_v0 = vld [vmem:[#allocation2] sm:$0xff]  ;;  %s92_s18 = smov 1   ;;  %s93_s19 = smov [#allocation5]  }
  0x13   :  { %22 = vrot.lane.b32.xlu0 %v21_v0, %s92_s18  ;;  %s31_s20 = sshll.u32 %s93_s19, 4  ;;  %s32_s20 = int_to_ptr.vmem [resolvable:$true] %s31_s20 }
  0x14   :  { %s65_s21 = scalar_lea.vmem %s32_s20, 128  ;;  %p70_p9 = scmp.lt.s32.totalorder %s32_s20, %s32_s20 }
  0x15   :  { %p66_p8 = scmp.ne.s32.totalorder %s32_s20, %s65_s21  ;;  %p71_p10 = scmp.lt.s32.totalorder %s65_s21, %s65_s21 }
  0x17   :  { %p72_p11 = por %p71_p10, %p70_p9 }
  0x19   :  { %p73_p12 = pnand %p72_p11, %p66_p8 }
  0x85   :  { %v23_v1 = vpop.permute.xlu0 %22 }
  0x86   :  { %24 = vst [vmem:[#allocation5] sm:$0xff] %v23_v1 }
  0x87   :  { %76 = shalt.err (!%p73_p12)
}
  0x88   :  { %s77_s0 = scalar_lea.hbm %s129_s1, 128 }
  0x89   :  { %p78_p13 = scmp.ne.s32.totalorder %s129_s1, %s77_s0  ;;  %p81_p0 = scmp.lt.u32.totalorder %s77_s0, %s129_s1 }
  0x8b   :  { %p83_p1 = pnand %p81_p0, %p78_p13 }
  0x8d   :  { %86 = shalt.err (!%p83_p1)
}
  0x8e   :  { %34 = dma.vmem_to_hbm [thread:$0]  %s32_s20, 128, %s129_s1, [#allocation4]  }
  0x8f   :  { %89 = dma.done.wait [#allocation4], 128  }
  0x90   :  { %90 = vsyncadd [#allocation4], 4294967168 }
  0x91   :  { %38 = vsyncpa [#allocation3], 1 }
  0x92   :  { %39 = vsyncpa [#allocation4], 1 }

</bundles_post_ra>
